<compile_context>
chip_gen: v6e
topology: v6e:2x2x1
jax: 0.10.0
libtpu: 0.0.40
codegen_flags: <defaults>
</compile_context>

<pallas_src>
import jax
import jax.numpy as jnp
from jax.experimental import pallas as pl
from jax.experimental.pallas import tpu as pltpu


def fused_linear_kernel(params_ref, x_ref, o_ref):
    # params_ref: SMEM (F_in*F_out + F_out,) f32 = [W_eff (row-major)..., b_eff...]
    # x_ref:      VMEM (F_in,  tile_n) f32   -- batch on the lane axis
    # o_ref:      VMEM (F_out, tile_n) f32
    f_in = x_ref.shape[0]
    f_out = o_ref.shape[0]
    for j in range(f_out):                      # static tiny loops (f_in=2, f_out=1)
        y = x_ref[0:1, :] * params_ref[0 * f_out + j]
        for i in range(1, f_in):
            y = y + x_ref[i:i + 1, :] * params_ref[i * f_out + j]
        y = y + params_ref[f_in * f_out + j]    # bias (scalar broadcast)
        o_ref[j:j + 1, :] = y


def circle_model1_forward(x, w1, b1, w2, b2, *, max_tile_n=4096):
    """x: (N, 2) f32; w1: (2,5); b1: (5,); w2: (5,1); b2: (1,). Returns (N, 1)."""
    N, F_in = x.shape
    H = w1.shape[1]
    F_out = w2.shape[1]

    # Fold the two activation-free Linear layers into one affine map.
    w_eff = (w1 @ w2).astype(jnp.float32)                                # (F_in, F_out)
    b_eff = (b1.reshape(1, H) @ w2 + b2.reshape(1, F_out)).astype(jnp.float32)
    params = jnp.concatenate(
        [w_eff.reshape(-1), b_eff.reshape(-1)]).astype(jnp.float32)      # (F_in*F_out + F_out,)

    # Lane-dense layout: pad the batch to a multiple of the lane tile and put it
    # on the last axis. max_tile_n must be a multiple of 128.
    n128 = ((N + 127) // 128) * 128
    tile_n = min(max_tile_n, n128)
    n_pad = ((N + tile_n - 1) // tile_n) * tile_n
    x_t = jnp.pad(x.astype(jnp.float32), ((0, n_pad - N), (0, 0))).T     # (F_in, n_pad)

    grid = (n_pad // tile_n,)
    y_t = pl.pallas_call(
        fused_linear_kernel,
        out_shape=jax.ShapeDtypeStruct((F_out, n_pad), jnp.float32),
        grid=grid,
        in_specs=[
            # 3 folded scalars: whole array in SMEM, no per-step DMA streams.
            pl.BlockSpec(memory_space=pltpu.MemorySpace.SMEM),
            # x tile: (F_in, tile_n) -- first dim equals the full array dim,
            # last dim a multiple of 128 (lane-dense loads).
            pl.BlockSpec((F_in, tile_n), lambda i: (0, i)),
        ],
        out_specs=pl.BlockSpec((F_out, tile_n), lambda i: (0, i)),
        compiler_params=pltpu.CompilerParams(
            dimension_semantics=("parallel",),
        ),
    )(params, x_t)

    # Back to the PyTorch (N, F_out) layout; drop the batch padding.
    return y_t.T[:N, :].astype(x.dtype)


def circle_model1_ref(x, w1, b1, w2, b2):
    h = x @ w1 + b1.reshape(1, -1)
    return h @ w2 + b2.reshape(1, -1)


if __name__ == "__main__":
    key = jax.random.PRNGKey(0)
    k_x, k_w1, k_b1, k_w2, k_b2 = jax.random.split(key, 5)

    # Small shapes consistent with the module: 1000 circle points with 2 features
    # (exercises the pad-to-128 path: 1000 -> 1024 lanes).
    N, F_IN, H, F_OUT = 1000, 2, 5, 1

    x = jax.random.normal(k_x, (N, F_IN), dtype=jnp.float32)

    # PyTorch-style uniform(-1/sqrt(fan_in), 1/sqrt(fan_in)) init.
    bound1 = 1.0 / jnp.sqrt(F_IN)
    bound2 = 1.0 / jnp.sqrt(H)
    w1 = jax.random.uniform(k_w1, (F_IN, H), jnp.float32, -bound1, bound1)
    b1 = jax.random.uniform(k_b1, (H,), jnp.float32, -bound1, bound1)
    w2 = jax.random.uniform(k_w2, (H, F_OUT), jnp.float32, -bound2, bound2)
    b2 = jax.random.uniform(k_b2, (F_OUT,), jnp.float32, -bound2, bound2)

    out = jax.block_until_ready(circle_model1_forward(x, w1, b1, w2, b2))

    ref = circle_model1_ref(x, w1, b1, w2, b2)
    assert out.shape == (N, F_OUT)
    assert jnp.allclose(out, ref, atol=1e-5, rtol=1e-5)

    print("KERNEL_OK")
</pallas_src>

<mosaic_0001>
module attributes {stable_mosaic.version = 11 : i64} {
  func.func @fused_linear_kernel(%arg0: i32, %arg1: memref<3xf32, #tpu.memory_space<smem>>, %arg2: memref<2x1024xf32, #tpu.memory_space<vmem>>, %arg3: memref<1x1024xf32, #tpu.memory_space<vmem>>) attributes {dimension_semantics = [#tpu.dimension_semantics<parallel>], iteration_bounds = array<i64: 1>, scalar_prefetch = 0 : i64, scratch_operands = 0 : i64, tpu.core_type = #tpu.core_type<tc>, window_params = [{transform_indices = @transform_0, window_bounds = array<i64: 3>}, {transform_indices = @transform_1, window_bounds = array<i64: 2, 1024>}, {transform_indices = @transform_2, window_bounds = array<i64: 1, 1024>}]} {
    %c0 = arith.constant 0 : index
    %c0_0 = arith.constant 0 : index
    %0 = vector.load %arg2[%c0, %c0_0] : memref<2x1024xf32, #tpu.memory_space<vmem>>, vector<1x1024xf32>
    %c0_1 = arith.constant 0 : index
    %1 = memref.load %arg1[%c0_1] : memref<3xf32, #tpu.memory_space<smem>>
    %2 = vector.broadcast %1 : f32 to vector<1x1024xf32>
    %3 = arith.mulf %0, %2 : vector<1x1024xf32>
    %c1 = arith.constant 1 : index
    %c0_2 = arith.constant 0 : index
    %4 = vector.load %arg2[%c1, %c0_2] : memref<2x1024xf32, #tpu.memory_space<vmem>>, vector<1x1024xf32>
    %c1_3 = arith.constant 1 : index
    %5 = memref.load %arg1[%c1_3] : memref<3xf32, #tpu.memory_space<smem>>
    %6 = vector.broadcast %5 : f32 to vector<1x1024xf32>
    %7 = arith.mulf %4, %6 : vector<1x1024xf32>
    %8 = arith.addf %3, %7 : vector<1x1024xf32>
    %c2 = arith.constant 2 : index
    %9 = memref.load %arg1[%c2] : memref<3xf32, #tpu.memory_space<smem>>
    %10 = vector.broadcast %9 : f32 to vector<1x1024xf32>
    %11 = arith.addf %8, %10 : vector<1x1024xf32>
    %c0_4 = arith.constant 0 : index
    %c0_5 = arith.constant 0 : index
    %12 = vector.load %arg3[%c0_4, %c0_5] : memref<1x1024xf32, #tpu.memory_space<vmem>>, vector<1x1024xf32>
    tpu.vector_store %arg3[%c0_4, %c0_5], %11 {strides = array<i32>} : memref<1x1024xf32, #tpu.memory_space<vmem>>, vector<1x1024xf32>,
    return
  }
  func.func @transform_0(%arg0: i32) -> i32 {
    %c0_i32 = arith.constant 0 : i32
    %c0_i32_0 = arith.constant 0 : i32
    return %c0_i32 : i32
  }
  func.func @transform_1(%arg0: i32) -> (i32, i32) {
    %c0_i32 = arith.constant 0 : i32
    %c0_i32_0 = arith.constant 0 : i32
    return %c0_i32, %arg0 : i32, i32
  }
  func.func @transform_2(%arg0: i32) -> (i32, i32) {
    %c0_i32 = arith.constant 0 : i32
    %c0_i32_0 = arith.constant 0 : i32
    return %c0_i32, %arg0 : i32, i32
  }
}

</mosaic_0001>

<bundles_post_ra>
// kernel: tpu_custom_call.1
= control target key start
LH: loop header
LB: loop body
LE: loop exit
PB: predicated region body
PF: predicated region fallthrough
CT: control target
= control target key end

     0   :  { %7 = vsyncpa [#allocation5], 0  ;;  %s151_s0 = inlined_call_operand.hbm [shape: f32[3], index: 0, kind: input, shape index: {}]   ;;  %s152_s1 = inlined_call_operand.hbm [shape: f32[2,1024], index: 1, kind: input, shape index: {}]   ;;  %s153_s2 = inlined_call_operand.hbm [shape: f32[1,1024], index: 2, kind: output, shape index: {}]  }
   0x1   :  { %8 = vsyncpa [#allocation3], 0 }
   0x2   :  { %9 = vsyncpa [#allocation4], 0  ;;  %s124_s9 = smov [#allocation2]   ;;  %s125_s12 = smov [#allocation6]  }
   0x3   :  { %17 = dma.hbm_to_smem %s151_s0, 16, %s124_s9, [#allocation5]  }
   0x4   :  { %s24_s13 = sshll.u32 %s125_s12, 4  ;;  %s25_s13 = int_to_ptr.vmem [resolvable:$true] %s24_s13 }
   0x5   :  { %s86_s14 = scalar_lea.vmem %s25_s13, 256  ;;  %p91_p1 = scmp.lt.s32.totalorder %s25_s13, %s25_s13 }
   0x6   :  { %p87_p0 = scmp.ne.s32.totalorder %s25_s13, %s86_s14  ;;  %p92_p2 = scmp.lt.s32.totalorder %s86_s14, %s86_s14 }
   0x8   :  { %p93_p3 = por %p92_p2, %p91_p1 }
   0xa   :  { %p94_p4 = pnand %p93_p3, %p87_p0 }
   0xc   :  { %97 = shalt.err (!%p94_p4)
}
   0xd   :  { %27 = dma.hbm_to_vmem [thread:$0]  %s152_s1, 256, %s25_s13, [#allocation3]  }
   0xe   :  { %118 = dma.done.wait [#allocation5], 16  }
   0xf   :  { %119 = vsyncadd [#allocation5], 4294967280 }
  0x10   :  { %120 = dma.done.wait [#allocation3], 256  }
  0x11   :  { %121 = vsyncadd [#allocation3], 4294967040 }
  0x12   :  { %34 = sfence }
  0x13   :  { %s36_s0 = sld [smem:[#allocation2]]  ;;  %v35_v0 = vld [vmem:[#allocation6] ss:$2 sm:$0xff]  ;;  %v40_v1 = vld [vmem:[#allocation6 + $0x1] ss:$2 sm:$0xff]  ;;  %s126_s19 = smov [#allocation7]  }
  0x14   :  { %s65_s17 = sld [smem:[#allocation2 + $0x1]]  ;;  %s55_s20 = sshll.u32 %s126_s19, 4  ;;  %s56_s20 = int_to_ptr.vmem [resolvable:$true] %s55_s20 }
  0x15   :  { %s66_s18 = sld [smem:[#allocation2 + $0x2]]  ;;  %s98_s1 = scalar_lea.vmem %s56_s20, 128 }
  0x16   :  { %p99_p5 = scmp.ne.s32.totalorder %s56_s20, %s98_s1  ;;  %p103_p6 = scmp.lt.s32.totalorder %s56_s20, %s56_s20 }
  0x17   :  { %p104_p7 = scmp.lt.s32.totalorder %s98_s1, %s98_s1 }
  0x19   :  { %v37_v2 = vstv %s36_s0  ;;  %p105_p8 = por %p104_p7, %p103_p6 }
  0x1a   :  { %v38_v3 = vmul.f32 %v37_v2, %v35_v0  ;;  %v42_v4 = vstv %s65_s17 }
  0x1b   :  { %v43_v5 = vmul.f32 %v42_v4, %v40_v1  ;;  %v46_v6 = vstv %s66_s18  ;;  %p106_p9 = pnand %p105_p8, %p99_p5 }
  0x1d   :  { %v44_v7 = vadd.f32 %v43_v5, %v38_v3 }
  0x1f   :  { %v47_v8 = vadd.f32 %v46_v6, %v44_v7 }
  0x21   :  { %48 = vst [vmem:[#allocation7] sm:$0xff] %v47_v8 }
  0x22   :  { %109 = shalt.err (!%p106_p9)
}
  0x23   :  { %58 = dma.vmem_to_hbm [thread:$0]  %s56_s20, 128, %s153_s2, [#allocation4]  }
  0x24   :  { %122 = dma.done.wait [#allocation4], 128  }
  0x25   :  { %123 = vsyncadd [#allocation4], 4294967168 }
  0x26   :  { %62 = vsyncpa [#allocation3], 1 }
  0x27   :  { %63 = vsyncpa [#allocation4], 1 }
  0x28   :  { %64 = vsyncpa [#allocation5], 1 }

</bundles_post_ra>
